<compile_context>
chip_gen: v7x
topology: tpu7x:2x2x1
jax: 0.10.0
libtpu: 0.0.40
codegen_flags: <defaults>
</compile_context>

<pallas_src>
import math

import numpy as np
import jax
import jax.numpy as jnp
from jax.experimental import pallas as pl
from jax.experimental.pallas import tpu as pltpu

_LANE = 128


def _round_up(v, m):
    return -(-v // m) * m


def _pick_row_tile(dim, preferred=512, align=_LANE):
    """Tile = multiple of `align` (<= preferred) that (nearly) minimizes padding;
    among near-minimal-padding candidates prefer the largest tile that still
    leaves >= 2 blocks (v7x has 2 TensorCores on the 'parallel' axis)."""
    dim = max(int(dim), 1)
    dim_min = _round_up(dim, align)
    cands = []
    t = align
    while t <= min(preferred, dim_min):
        cands.append((t, _round_up(dim, t)))
        t += align
    best_pad = min(p for _, p in cands)
    slack = max(dim // 16, 0)                      # allow ~6% extra padding
    near = [(t, p) for t, p in cands if p <= best_pad + slack]
    multi = [t for t, p in near if p // t >= 2]
    tile = max(multi) if multi else max(t for t, _ in near)
    return tile, _round_up(dim, tile)


# ---------------------------------------------------------------------------
# One-time, host-side adjacency preprocessing (hoisted: adj is static across
# layers / training steps).  Produces padded bf16 adj + block-sparsity lists.
# ---------------------------------------------------------------------------
def precompute_adj(adj, *, preferred_tile=512, compute_dtype=jnp.bfloat16):
    adj_np = np.asarray(adj)
    n = adj_np.shape[0]
    t_n, n_pad = _pick_row_tile(n, preferred_tile)
    gi = n_pad // t_n

    adj_p = np.zeros((n_pad, n_pad), dtype=np.float32)
    adj_p[:n, :n] = adj_np

    blocks = adj_p.reshape(gi, t_n, gi, t_n)
    flags = np.abs(blocks).sum(axis=(1, 3)) > 0            # (gi, gk) bool
    nnz = flags.sum(axis=1).astype(np.int32)               # (gi,)
    max_nnz = max(int(nnz.max()), 1)

    # Compacted per-row-block nonzero k-block indices, flattened to 1-D (SMEM).
    kidx = np.zeros((gi, max_nnz), dtype=np.int32)
    for i in range(gi):
        nz = np.nonzero(flags[i])[0].astype(np.int32)
        if nz.size:
            kidx[i, :nz.size] = nz
            kidx[i, nz.size:] = nz[-1]   # repeat last valid index: padded grid
                                         # steps issue no new DMA (index unchanged)
    return dict(
        adj=jnp.asarray(adj_p, dtype=compute_dtype),
        nnz=jnp.asarray(nnz),
        kidx=jnp.asarray(kidx.reshape(-1)),
        n=n, t_n=t_n, n_pad=n_pad, gi=gi, max_nnz=max_nnz,
        compute_dtype=compute_dtype,
    )


# ---------------------------------------------------------------------------
# Kernel 1: support = x @ W   (reduction-last grid, W fully resident in VMEM)
# ---------------------------------------------------------------------------
def _make_xw_kernel(t_fin, w_resident):
    def kernel(x_ref, w_ref, s_ref, acc_ref):
        k = pl.program_id(1)

        @pl.when(k == 0)
        def _():
            acc_ref[...] = jnp.zeros_like(acc_ref)

        if w_resident:
            off = pl.multiple_of(k * t_fin, 128)
            w_blk = w_ref[pl.ds(off, t_fin), :]
        else:
            w_blk = w_ref[...]
        acc_ref[...] += jnp.dot(x_ref[...], w_blk,
                                preferred_element_type=jnp.float32)

        @pl.when(k == pl.num_programs(1) - 1)
        def _():
            s_ref[...] = acc_ref[...].astype(s_ref.dtype)
    return kernel


# ---------------------------------------------------------------------------
# Kernel 2: out = adj @ support + bias
#   - adj read once (no j tiling), zero adjacency blocks skip DMA + MXU
#   - support either fully VMEM-resident (sliced in-kernel) or streamed per block
# ---------------------------------------------------------------------------
def _make_spmm_kernel(t_n, max_nnz, sup_resident):
    def kernel(nnz_ref, kidx_ref, adj_ref, s_ref, b_ref, o_ref, acc_ref):
        i = pl.program_id(0)
        s = pl.program_id(1)

        @pl.when(s == 0)
        def _():
            acc_ref[...] = jnp.zeros_like(acc_ref)

        # Padded entries of the compacted index list are masked here; their adj /
        # support index_maps repeat the previous block index, so no DMA is issued.
        @pl.when(s < nnz_ref[i])
        def _():
            if sup_resident:
                kblk = kidx_ref[i * max_nnz + s]
                row0 = pl.multiple_of(kblk * t_n, 128)
                sup = s_ref[pl.ds(row0, t_n), :]
            else:
                sup = s_ref[...]
            acc_ref[...] += jnp.dot(adj_ref[...], sup,
                                    preferred_element_type=jnp.float32)

        @pl.when(s == pl.num_programs(1) - 1)
        def _():
            o_ref[...] = (acc_ref[...] + b_ref[...]).astype(o_ref.dtype)
    return kernel


def _compiler_params(dim_sem, est_bytes):
    kw = dict(dimension_semantics=dim_sem)
    # Default scoped VMEM is plenty for small tiles; only request more when the
    # footprint needs it, leaving headroom under v7x's 64 MiB/core.
    if est_bytes > (24 << 20):
        kw["vmem_limit_bytes"] = int(min(est_bytes + (8 << 20), 56 << 20))
    return pltpu.CompilerParams(**kw)


def gcn_forward(x, adj, weight, bias=None, *, compute_dtype=jnp.bfloat16,
                preferred_tile=512):
    """GCN layer forward: adj @ (x @ weight) + bias.

    `adj` may be a dense [N, N] array (preprocessed here) or, preferably, the
    dict returned by precompute_adj() hoisted out of the training step."""
    if not isinstance(adj, dict):
        adj = precompute_adj(adj, preferred_tile=preferred_tile,
                             compute_dtype=compute_dtype)
    adj_pre = adj
    compute_dtype = adj_pre["compute_dtype"]

    n, f_in = x.shape
    f_out = weight.shape[1]
    out_dtype = x.dtype
    assert adj_pre["n"] == n, "adjacency / feature row count mismatch"
    t_n, n_pad, gi = adj_pre["t_n"], adj_pre["n_pad"], adj_pre["gi"]
    max_nnz = adj_pre["max_nnz"]
    csize = jnp.dtype(compute_dtype).itemsize

    # Output-feature dim is NOT tiled -> adj is streamed exactly once in kernel 2.
    fout_pad = _round_up(f_out, _LANE)
    t_fin, fin_pad = _pick_row_tile(f_in, preferred_tile)

    # Zero-pad (exact; padded region sliced away at the end) + cast for the MXU.
    x_c = jnp.pad(x, ((0, n_pad - n), (0, fin_pad - f_in))).astype(compute_dtype)
    w_p = jnp.pad(weight, ((0, fin_pad - f_in),
                           (0, fout_pad - f_out))).astype(compute_dtype)
    if bias is None:
        b_p = jnp.zeros((1, fout_pad), jnp.float32)
    else:
        b_p = jnp.pad(bias.astype(jnp.float32),
                      (0, fout_pad - f_out)).reshape(1, fout_pad)

    # ----------------- kernel 1: support = x @ W -----------------
    # TODO(synk): for normalized adjacencies where accuracy matters, store
    # support in f32 instead of compute_dtype (costs f32-rate MXU in kernel 2).
    w_bytes = fin_pad * fout_pad * csize
    w_resident = 2 * w_bytes <= (16 << 20)
    grid1 = (n_pad // t_n, fin_pad // t_fin)
    if w_resident:
        w_spec = pl.BlockSpec((fin_pad, fout_pad), lambda i, k: (0, 0))
    else:
        w_spec = pl.BlockSpec((t_fin, fout_pad), lambda i, k: (k, 0))
    est1 = (2 * t_n * t_fin * csize
            + (2 * w_bytes if w_resident else 2 * t_fin * fout_pad * csize)
            + 2 * t_n * fout_pad * csize
            + t_n * fout_pad * 4)

    support = pl.pallas_call(
        _make_xw_kernel(t_fin, w_resident),
        out_shape=jax.ShapeDtypeStruct((n_pad, fout_pad), compute_dtype),
        grid=grid1,
        in_specs=[pl.BlockSpec((t_n, t_fin), lambda i, k: (i, k)), w_spec],
        out_specs=pl.BlockSpec((t_n, fout_pad), lambda i, k: (i, 0)),
        scratch_shapes=[pltpu.VMEM((t_n, fout_pad), jnp.float32)],
        compiler_params=_compiler_params(("parallel", "arbitrary"), est1),
    )(x_c, w_p)

    # ------------- kernel 2: out = adj @ support + bias -------------
    sup_bytes = n_pad * fout_pad * csize
    sup_resident = 2 * sup_bytes <= (24 << 20)   # conservative (assume 2 buffers)

    if sup_resident:
        sup_spec = pl.BlockSpec((n_pad, fout_pad),
                                lambda i, s, nnz, kidx: (0, 0))
    else:
        sup_spec = pl.BlockSpec((t_n, fout_pad),
                                lambda i, s, nnz, kidx: (kidx[i * max_nnz + s], 0))
    adj_spec = pl.BlockSpec((t_n, t_n),
                            lambda i, s, nnz, kidx: (i, kidx[i * max_nnz + s]))
    est2 = (2 * t_n * t_n * csize
            + (2 * sup_bytes if sup_resident else 2 * t_n * fout_pad * csize)
            + 2 * fout_pad * 4
            + 2 * t_n * fout_pad * jnp.dtype(out_dtype).itemsize
            + t_n * fout_pad * 4)

    out_p = pl.pallas_call(
        _make_spmm_kernel(t_n, max_nnz, sup_resident),
        out_shape=jax.ShapeDtypeStruct((n_pad, fout_pad), out_dtype),
        grid_spec=pltpu.PrefetchScalarGridSpec(
            num_scalar_prefetch=2,
            grid=(gi, max_nnz),
            in_specs=[
                adj_spec,
                sup_spec,
                pl.BlockSpec((1, fout_pad), lambda i, s, nnz, kidx: (0, 0)),
            ],
            out_specs=pl.BlockSpec((t_n, fout_pad),
                                   lambda i, s, nnz, kidx: (i, 0)),
            scratch_shapes=[pltpu.VMEM((t_n, fout_pad), jnp.float32)],
        ),
        compiler_params=_compiler_params(("parallel", "arbitrary"), est2),
    )(adj_pre["nnz"], adj_pre["kidx"], adj_pre["adj"], support, b_p)

    return out_p[:n, :f_out]


# ---------------------------------------------------------------------------
# Self-test
# ---------------------------------------------------------------------------
def _bf16_reference(x, adj, w, b):
    xb = x.astype(jnp.bfloat16)
    wb = w.astype(jnp.bfloat16)
    ab = adj.astype(jnp.bfloat16)
    sup = jnp.dot(xb, wb, preferred_element_type=jnp.float32).astype(jnp.bfloat16)
    out = jnp.dot(ab, sup, preferred_element_type=jnp.float32)
    return out + b if b is not None else out


if __name__ == "__main__":
    key = jax.random.PRNGKey(0)

    def run_case(case_key, n, f_in, f_out, make_adj):
        k_x, k_adj, k_w, k_b = jax.random.split(case_key, 4)
        x = jax.random.normal(k_x, (n, f_in), dtype=jnp.float32)
        adj = make_adj(k_adj, n)

        # reset_parameters(): uniform(-stdv, stdv), stdv = 1 / sqrt(out_features)
        stdv = 1.0 / math.sqrt(f_out)
        w = jax.random.uniform(k_w, (f_in, f_out), minval=-stdv, maxval=stdv,
                               dtype=jnp.float32)
        b = jax.random.uniform(k_b, (f_out,), minval=-stdv, maxval=stdv,
                               dtype=jnp.float32)

        adj_pre = precompute_adj(adj)          # hoisted: once per (static) graph
        out = jax.block_until_ready(gcn_forward(x, adj_pre, w, b))
        assert out.shape == (n, f_out)

        ref = _bf16_reference(x, adj, w, b)
        assert jnp.allclose(out, ref, atol=3e-2, rtol=3e-2), \
            "mismatch vs bf16-matched reference"
        ref32 = adj @ (x @ w) + b
        assert jnp.allclose(out, ref32, atol=2.5e-1, rtol=2.5e-1), \
            "mismatch vs f32 reference"
        return out

    def small_adj(k, n):
        # TODO(synk): torch.spmm's sparse-COO has no direct Pallas equivalent; the
        # kernel skips all-zero (t_n, t_n) adjacency blocks at the DMA level.
        a = (jax.random.uniform(k, (n, n)) < 0.3).astype(jnp.float32)
        return jnp.maximum(a, jnp.eye(n, dtype=jnp.float32))

    def blocky_adj(k, n, group=100):
        grp = jnp.arange(n) // group
        same = grp[:, None] == grp[None, :]
        a = ((jax.random.uniform(k, (n, n)) < 0.3) & same).astype(jnp.float32)
        return jnp.maximum(a, jnp.eye(n, dtype=jnp.float32))

    k1, k2 = jax.random.split(key)
    run_case(k1, 8, 32, 16, small_adj)                        # tiny sanity case
    run_case(k2, 300, 70, 40, lambda k, n: blocky_adj(k, n))  # multi-block + zero blocks

    print("KERNEL_OK")
</pallas_src>

<mosaic_0001>
module attributes {stable_mosaic.version = 11 : i64} {
  func.func @kernel(%arg0: i32, %arg1: i32, %arg2: memref<128x128xbf16, #tpu.memory_space<vmem>>, %arg3: memref<128x128xbf16, #tpu.memory_space<vmem>>, %arg4: memref<128x128xbf16, #tpu.memory_space<vmem>>, %arg5: memref<128x128xf32, #tpu.memory_space<vmem>>) attributes {dimension_semantics = [#tpu.dimension_semantics<parallel>, #tpu.dimension_semantics<arbitrary>], iteration_bounds = array<i64: 1, 1>, scalar_prefetch = 0 : i64, scratch_operands = 1 : i64, tpu.core_type = #tpu.core_type<tc>, window_params = [{transform_indices = @transform_0, window_bounds = array<i64: 128, 128>}, {pipeline_mode = #tpu.pipeline_mode<synchronous>, transform_indices = @transform_1, window_bounds = array<i64: 128, 128>}, {transform_indices = @transform_2, window_bounds = array<i64: 128, 128>}]} {
    %c0_i32 = arith.constant 0 : i32
    %0 = arith.cmpi eq, %arg1, %c0_i32 : i32
    %1 = arith.extui %0 : i1 to i32
    %c0_i32_0 = arith.constant 0 : i32
    %2 = arith.cmpi ne, %1, %c0_i32_0 : i32
    scf.if %2 {
      %cst_9 = arith.constant 0.000000e+00 : f32
      %15 = vector.broadcast %cst_9 : f32 to vector<128x128xf32>
      %c0_10 = arith.constant 0 : index
      %c0_11 = arith.constant 0 : index
      %16 = vector.load %arg5[%c0_10, %c0_11] : memref<128x128xf32, #tpu.memory_space<vmem>>, vector<128x128xf32>
      tpu.vector_store %arg5[%c0_10, %c0_11], %15 {strides = array<i32>} : memref<128x128xf32, #tpu.memory_space<vmem>>, vector<128x128xf32>,
    } else {
    }
    %c128_i32 = arith.constant 128 : i32
    %3 = arith.muli %arg1, %c128_i32 : i32
    %4 = tpu.assume_multiple %3, 128 : i32
    %5 = arith.index_cast %4 : i32 to index
    %c0 = arith.constant 0 : index
    %6 = vector.load %arg3[%5, %c0] : memref<128x128xbf16, #tpu.memory_space<vmem>>, vector<128x128xbf16>
    %c0_1 = arith.constant 0 : index
    %c0_2 = arith.constant 0 : index
    %7 = vector.load %arg5[%c0_1, %c0_2] : memref<128x128xf32, #tpu.memory_space<vmem>>, vector<128x128xf32>
    %c0_3 = arith.constant 0 : index
    %c0_4 = arith.constant 0 : index
    %8 = vector.load %arg2[%c0_3, %c0_4] : memref<128x128xbf16, #tpu.memory_space<vmem>>, vector<128x128xbf16>
    %cst = arith.constant dense<0.000000e+00> : vector<128x128xf32>
    %9 = tpu.matmul %8, %6, %cst {dimension_numbers = #tpu.dot_dimension_numbers<[1], [0], [0], [1], [0, 0, 1, 1], [], []>} : vector<128x128xbf16>, vector<128x128xbf16>, vector<128x128xf32> -> vector<128x128xf32>
    %10 = arith.addf %7, %9 : vector<128x128xf32>
    %c0_5 = arith.constant 0 : index
    %c0_6 = arith.constant 0 : index
    %11 = vector.load %arg5[%c0_5, %c0_6] : memref<128x128xf32, #tpu.memory_space<vmem>>, vector<128x128xf32>
    tpu.vector_store %arg5[%c0_5, %c0_6], %10 {strides = array<i32>} : memref<128x128xf32, #tpu.memory_space<vmem>>, vector<128x128xf32>,
    %c0_i32_7 = arith.constant 0 : i32
    %12 = arith.cmpi eq, %arg1, %c0_i32_7 : i32
    %13 = arith.extui %12 : i1 to i32
    %c0_i32_8 = arith.constant 0 : i32
    %14 = arith.cmpi ne, %13, %c0_i32_8 : i32
    scf.if %14 {
      %c0_9 = arith.constant 0 : index
      %c0_10 = arith.constant 0 : index
      %15 = vector.load %arg5[%c0_9, %c0_10] : memref<128x128xf32, #tpu.memory_space<vmem>>, vector<128x128xf32>
      %16 = arith.truncf %15 : vector<128x128xf32> to vector<128x128xbf16>
      %c0_11 = arith.constant 0 : index
      %c0_12 = arith.constant 0 : index
      %17 = vector.load %arg4[%c0_11, %c0_12] : memref<128x128xbf16, #tpu.memory_space<vmem>>, vector<128x128xbf16>
      tpu.vector_store %arg4[%c0_11, %c0_12], %16 {strides = array<i32>} : memref<128x128xbf16, #tpu.memory_space<vmem>>, vector<128x128xbf16>,
    } else {
    }
    return
  }
  func.func @transform_0(%arg0: i32, %arg1: i32) -> (i32, i32) {
    %c0_i32 = arith.constant 0 : i32
    return %arg0, %arg1 : i32, i32
  }
  func.func @transform_1(%arg0: i32, %arg1: i32) -> (i32, i32) {
    %c0_i32 = arith.constant 0 : i32
    %c0_i32_0 = arith.constant 0 : i32
    %c0_i32_1 = arith.constant 0 : i32
    return %c0_i32, %c0_i32_0 : i32, i32
  }
  func.func @transform_2(%arg0: i32, %arg1: i32) -> (i32, i32) {
    %c0_i32 = arith.constant 0 : i32
    %c0_i32_0 = arith.constant 0 : i32
    return %arg0, %c0_i32 : i32, i32
  }
}

</mosaic_0001>

<bundles_post_ra>
// kernel: tpu_custom_call.1
= control target key start
LH: loop header
LB: loop body
LE: loop exit
PB: predicated region body
PF: predicated region fallthrough
CT: control target
= control target key end

     0   :  { %7 = vsyncpa [#allocation4], 0  ;;  %s775_s0 = inlined_call_operand.hbm [shape: bf16[128,128], index: 0, kind: input, shape index: {}]   ;;  %s776_s1 = inlined_call_operand.hbm [shape: bf16[128,128], index: 1, kind: input, shape index: {}]   ;;  %s777_s2 = inlined_call_operand.hbm [shape: bf16[128,128], index: 2, kind: output, shape index: {}]  }
   0x1   :  { %8 = vsyncpa [#allocation7], 0 }
   0x2   :  { %9 = vsyncpa [#allocation5], 0  ;;  %s710_s9 = smov [#allocation3]   ;;  %s638_s13 = scalar_lea.hbm %s775_s0, 1024 }
   0x3   :  { %s15_s10 = sshll.u32 %s710_s9, 4  ;;  %p639_p0 = scmp.ne.s32.totalorder %s775_s0, %s638_s13  ;;  %s16_s10 = int_to_ptr.vmem [resolvable:$true] %s15_s10 }
   0x4   :  { %p642_p1 = scmp.lt.u32.totalorder %s638_s13, %s775_s0 }
   0x6   :  { %p644_p2 = pnand %p642_p1, %p639_p0 }
   0x8   :  { %647 = shalt.err (!%p644_p2)
}
   0x9   :  { %s648_s18 = scalar_lea.vmem %s16_s10, 1024  ;;  %p653_p4 = scmp.lt.s32.totalorder %s16_s10, %s16_s10 }
   0xa   :  { %p649_p3 = scmp.ne.s32.totalorder %s16_s10, %s648_s18  ;;  %p654_p5 = scmp.lt.s32.totalorder %s648_s18, %s648_s18 }
   0xc   :  { %p655_p6 = por %p654_p5, %p653_p4 }
   0xe   :  { %p656_p7 = pnand %p655_p6, %p649_p3 }
  0x10   :  { %659 = shalt.err (!%p656_p7)
}
  0x11   :  { %s711_s19 = smov 64   ;;  %s712_s20 = smov 4  }
  0x12   :  { %21 = dma.hbm_to_vmem [thread:$0]  %s775_s0, 1024, %s16_s10, [#allocation4], %s711_s19, %s711_s19, %s712_s20  }
  0x13   :  { %s713_s23 = smov [#allocation6]   ;;  %s660_s27 = scalar_lea.hbm %s776_s1, 1024 }
  0x14   :  { %s27_s24 = sshll.u32 %s713_s23, 4  ;;  %p661_p8 = scmp.ne.s32.totalorder %s776_s1, %s660_s27  ;;  %s28_s24 = int_to_ptr.vmem [resolvable:$true] %s27_s24 }
  0x15   :  { %p664_p9 = scmp.lt.u32.totalorder %s660_s27, %s776_s1 }
  0x17   :  { %p666_p10 = pnand %p664_p9, %p661_p8 }
  0x19   :  { %669 = shalt.err (!%p666_p10)
}
  0x1a   :  { %s670_s4 = scalar_lea.vmem %s28_s24, 1024  ;;  %p675_p12 = scmp.lt.s32.totalorder %s28_s24, %s28_s24 }
  0x1b   :  { %p671_p11 = scmp.ne.s32.totalorder %s28_s24, %s670_s4  ;;  %p676_p13 = scmp.lt.s32.totalorder %s670_s4, %s670_s4 }
  0x1d   :  { %p677_p0 = por %p676_p13, %p675_p12 }
  0x1f   :  { %p678_p1 = pnand %p677_p0, %p671_p11 }
  0x21   :  { %681 = shalt.err (!%p678_p1)
}
  0x22   :  { %33 = dma.hbm_to_vmem [thread:$0]  %s776_s1, 1024, %s28_s24, [#allocation7], %s711_s19, %s711_s19, %s712_s20  }
  0x23   :  { %704 = dma.done.wait [#allocation4], 1024  }
  0x24   :  { %705 = vsyncadd [#allocation4], 4294966272 }
  0x25   :  { %706 = dma.done.wait [#allocation7], 1024  }
  0x26   :  { %707 = vsyncadd [#allocation7], 4294966272  ;;  %v622_v0 = vld [vmem:[#allocation6] sm:$0xff]   ;;  %v623_v1 = vld [vmem:[#allocation6 + $0x8] sm:$0xff]   ;;  %s714_s1 = smov [#allocation8]  }
  0x27   :  { %569 = vmatprep.subr.bf16.mxu0 %v622_v0  ;;  %601 = vmatprep.subr.bf16.mxu1 %v622_v0  ;;  %v624_v2 = vld [vmem:[#allocation6 + $0x10] sm:$0xff]   ;;  %v625_v3 = vld [vmem:[#allocation6 + $0x18] sm:$0xff]   ;;  %v630_v4 = vld [vmem:[#allocation3] sm:$0xff]   ;;  %s443_s6 = sshll.u32 %s714_s1, 4  ;;  %s444_s6 = int_to_ptr.vmem [resolvable:$true] %s443_s6 }
  0x28   :  { %570 = vmatpush3.bf16.msra.mxu0 %v622_v0  ;;  %609 = vmatpush3.bf16.msra.mxu1 %v622_v0  ;;  %v631_v5 = vld [vmem:[#allocation3 + $0x20] sm:$0xff]   ;;  %v627_v7 = vld [vmem:[#allocation6 + $0x28] sm:$0xff]   ;;  %v628_v8 = vld [vmem:[#allocation6 + $0x30] sm:$0xff]   ;;  %s682_s7 = scalar_lea.vmem %s444_s6, 1024  ;;  %p687_p3 = scmp.lt.s32.totalorder %s444_s6, %s444_s6 }
  0x29   :  { %571 = vmatprep.subr.bf16.mxu0 %v623_v1  ;;  %602 = vmatprep.subr.bf16.mxu1 %v623_v1  ;;  %v626_v6 = vld [vmem:[#allocation6 + $0x20] sm:$0xff]   ;;  %v629_v9 = vld [vmem:[#allocation6 + $0x38] sm:$0xff]   ;;  %v632_v10 = vld [vmem:[#allocation3 + $0x8] sm:$0xff]   ;;  %p683_p2 = scmp.ne.s32.totalorder %s444_s6, %s682_s7  ;;  %p688_p4 = scmp.lt.s32.totalorder %s682_s7, %s682_s7 }
  0x2a   :  { %585 = vmatprep.mubr.bf16.mxu0 %v630_v4  ;;  %593 = vmatprep.mubr.bf16.mxu1 %v631_v5  ;;  %v633_v11 = vld [vmem:[#allocation3 + $0x28] sm:$0xff]   ;;  %v634_v12 = vld [vmem:[#allocation3 + $0x10] sm:$0xff]   ;;  %v636_v14 = vld [vmem:[#allocation3 + $0x18] sm:$0xff]  }
  0x2b   :  { %v635_v13 = vld [vmem:[#allocation3 + $0x30] sm:$0xff]   ;;  %v637_v15 = vld [vmem:[#allocation3 + $0x38] sm:$0xff]   ;;  %p689_p5 = por %p688_p4, %p687_p3 }
  0x2c   :  { %572 = vmatpush3.bf16.msra.mxu0 %v623_v1  ;;  %610 = vmatpush3.bf16.msra.mxu1 %v623_v1 }
  0x2d   :  { %573 = vmatprep.subr.bf16.mxu0 %v624_v2  ;;  %603 = vmatprep.subr.bf16.mxu1 %v624_v2  ;;  %p690_p6 = pnand %p689_p5, %p683_p2 }
  0x30   :  { %574 = vmatpush3.bf16.msra.mxu0 %v624_v2  ;;  %611 = vmatpush3.bf16.msra.mxu1 %v624_v2 }
  0x31   :  { %575 = vmatprep.subr.bf16.mxu0 %v625_v3  ;;  %604 = vmatprep.subr.bf16.mxu1 %v625_v3 }
  0x34   :  { %576 = vmatpush3.bf16.msra.mxu0 %v625_v3  ;;  %612 = vmatpush3.bf16.msra.mxu1 %v625_v3 }
  0x35   :  { %577 = vmatprep.subr.bf16.mxu0 %v626_v6  ;;  %605 = vmatprep.subr.bf16.mxu1 %v626_v6 }
  0x38   :  { %578 = vmatpush3.bf16.msra.mxu0 %v626_v6  ;;  %613 = vmatpush3.bf16.msra.mxu1 %v626_v6 }
  0x39   :  { %579 = vmatprep.subr.bf16.mxu0 %v627_v7  ;;  %606 = vmatprep.subr.bf16.mxu1 %v627_v7 }
  0x3c   :  { %580 = vmatpush3.bf16.msra.mxu0 %v627_v7  ;;  %614 = vmatpush3.bf16.msra.mxu1 %v627_v7 }
  0x3d   :  { %581 = vmatprep.subr.bf16.mxu0 %v628_v8  ;;  %607 = vmatprep.subr.bf16.mxu1 %v628_v8 }
  0x40   :  { %582 = vmatpush3.bf16.msra.mxu0 %v628_v8  ;;  %615 = vmatpush3.bf16.msra.mxu1 %v628_v8 }
  0x41   :  { %583 = vmatprep.subr.bf16.mxu0 %v629_v9  ;;  %608 = vmatprep.subr.bf16.mxu1 %v629_v9 }
  0x44   :  { %584 = vmatpush3.bf16.msra.mxu0 %v629_v9  ;;  %616 = vmatpush3.bf16.msra.mxu1 %v629_v9 }
  0x47   :  { %586 = vmatmul.mubr.bf16.vlgmr.msra.gmra.mrb[0].mxu0 %v632_v10  ;;  %594 = vmatmul.mubr.bf16.vlgmr.msra.gmra.mrb[0].mxu1 %v633_v11 }
  0x48   :  { %589 = vmatprep.mubr.bf16.mxu0 %v634_v12  ;;  %597 = vmatprep.mubr.bf16.mxu1 %v635_v13 }
  0x4f   :  { %590 = vmatmul.mubr.bf16.gmra.mrb[4].mxu0 %v636_v14  ;;  %598 = vmatmul.mubr.bf16.gmra.mrb[4].mxu1 %v637_v15 }
 0x11a   :  { %v587_v16 = vpop.f32.mrb[0].mxu0  ;;  %v595_v17 = vpop.f32.mrb[0].mxu1 }
 0x11b   :  { %v244_v18 = vpop.f32.mrb[1].mxu0  ;;  %v276_v19 = vpop.f32.mrb[1].mxu1 }
 0x11c   :  { %v588_v20 = vpop.f32.mrb[2].mxu0  ;;  %v596_v21 = vpop.f32.mrb[2].mxu1 }
 0x11d   :  { %v514_v22 = vpack.c.bf16 %v588_v20, %v587_v16  ;;  %v534_v23 = vpack.c.bf16 %v596_v21, %v595_v17  ;;  %v247_v24 = vpop.f32.mrb[3].mxu0  ;;  %v279_v25 = vpop.f32.mrb[3].mxu1 }
 0x11e   :  { %v509_v26 = vpack.c.bf16 %v247_v24, %v244_v18  ;;  %v529_v27 = vpack.c.bf16 %v279_v25, %v276_v19 }
 0x11f   :  { %546 = vst [vmem:[#allocation8 + $0x8] sm:$0xff] %v514_v22   ;;  %550 = vst [vmem:[#allocation8 + $0x28] sm:$0xff] %v534_v23  }
 0x120   :  { %510 = vst [vmem:[#allocation8] sm:$0xff] %v509_v26   ;;  %549 = vst [vmem:[#allocation8 + $0x20] sm:$0xff] %v529_v27  }
 0x122   :  { %v591_v28 = vpop.f32.mrb[4].mxu0  ;;  %v599_v29 = vpop.f32.mrb[4].mxu1 }
 0x123   :  { %v260_v30 = vpop.f32.mrb[5].mxu0  ;;  %v292_v31 = vpop.f32.mrb[5].mxu1 }
 0x124   :  { %v592_v32 = vpop.f32.mrb[6].mxu0  ;;  %v600_v33 = vpop.f32.mrb[6].mxu1 }
 0x125   :  { %v524_v34 = vpack.c.bf16 %v592_v32, %v591_v28  ;;  %v544_v35 = vpack.c.bf16 %v600_v33, %v599_v29  ;;  %v263_v36 = vpop.f32.mrb[7].mxu0  ;;  %v295_v37 = vpop.f32.mrb[7].mxu1 }
 0x126   :  { %v519_v38 = vpack.c.bf16 %v263_v36, %v260_v30  ;;  %v539_v39 = vpack.c.bf16 %v295_v37, %v292_v31 }
 0x127   :  { %548 = vst [vmem:[#allocation8 + $0x18] sm:$0xff] %v524_v34   ;;  %552 = vst [vmem:[#allocation8 + $0x38] sm:$0xff] %v544_v35  }
 0x128   :  { %547 = vst [vmem:[#allocation8 + $0x10] sm:$0xff] %v519_v38   ;;  %551 = vst [vmem:[#allocation8 + $0x30] sm:$0xff] %v539_v39  }
 0x129   :  { %693 = shalt.err (!%p690_p6)
}
 0x12a   :  { %s694_s10 = scalar_lea.hbm %s777_s2, 1024 }
 0x12b   :  { %p695_p7 = scmp.ne.s32.totalorder %s777_s2, %s694_s10  ;;  %p698_p8 = scmp.lt.u32.totalorder %s694_s10, %s777_s2 }
 0x12d   :  { %p700_p9 = pnand %p698_p8, %p695_p7 }
 0x12f   :  { %703 = shalt.err (!%p700_p9)
}
 0x130   :  { %449 = dma.vmem_to_hbm [thread:$0]  %s444_s6, 1024, %s777_s2, [#allocation5], %s711_s19, %s711_s19, %s712_s20  }
 0x131   :  { %708 = dma.done.wait [#allocation5], 1024  }
 0x132   :  { %709 = vsyncadd [#allocation5], 4294966272 }
 0x133   :  { %453 = vsyncpa [#allocation4], 1 }
 0x134   :  { %454 = vsyncpa [#allocation7], 1 }
 0x135   :  { %455 = vsyncpa [#allocation5], 1 }

</bundles_post_ra>
